<compile_context>
chip_gen: v7x
topology: tpu7x:2x2x1
jax: 0.10.0
libtpu: 0.0.40
codegen_flags: <defaults>
</compile_context>

<pallas_src>
import functools

import jax
import jax.numpy as jnp
from jax.experimental import pallas as pl
from jax.experimental.pallas import tpu as pltpu


def _round_up(x, m):
    return (x + m - 1) // m * m


def _contrastive_loss_kernel(x1_ref, x2_ref, y_ref, out_ref, *,
                             margin, weight, eps, k, d, rows_valid, tile_r):
    # x1_ref/x2_ref: (tile_r, k*d) tile in native dtype; y_ref: (tile_r, k) f32.
    x1 = x1_ref[...].astype(jnp.float32)
    x2 = x2_ref[...].astype(jnp.float32)
    y = y_ref[...].astype(jnp.float32)

    # Elementwise (|x1 - x2| + eps)^2 on the lane-dense packed tile.
    sq = jnp.abs(x1 - x2) + jnp.float32(eps)
    sq = sq * sq                                               # (tile_r, k*d)

    # Segmented per-(original-)row reduction over the k packed feature groups.
    parts = [jnp.sum(sq[:, j * d:(j + 1) * d], axis=1, keepdims=True)
             for j in range(k)]
    dist_sq = parts[0] if k == 1 else jnp.concatenate(parts, axis=1)  # (tile_r, k)

    dist = jnp.sqrt(dist_sq)
    mdist = jnp.maximum(jnp.float32(margin) - dist, 0.0)
    loss = (y * dist_sq
            + jnp.float32(weight) * (1.0 - y) * (mdist * mdist)) * 0.5  # (tile_r, k)

    # Mask padded (out-of-range) packed rows so they contribute zero.
    row0 = pl.program_id(0) * tile_r
    row_ids = row0 + jax.lax.broadcasted_iota(jnp.int32, (tile_r, 1), 0)
    loss = jnp.where(row_ids < rows_valid, loss, 0.0)

    # One scalar partial sum per tile; mean (divide by N) is done in the wrapper.
    out_ref[0, 0] = jnp.sum(loss)


def contrastive_loss(x1, x2, y, *, margin, weight=1.0, eps=1e-6):
    """x1, x2: (N, D); y: (N,). Returns scalar mean contrastive loss."""
    n, d = x1.shape

    # Lane packing: fold k original rows into one lane-dense physical row
    # when D < 128 (only if N divides evenly; otherwise fall back to k=1).
    k = max(1, 128 // d)
    if n % k != 0:
        k = 1
    rows = n // k

    x1p = x1.reshape(rows, k * d)                    # native dtype, no wrapper cast
    x2p = x2.reshape(rows, k * d)
    yp = y.reshape(rows, k).astype(jnp.float32)

    # Batch tile sized well under scoped VMEM on all generations (v5e 16 MiB,
    # v7x 32 MiB default): 2 inputs x 2 pipeline buffers x tile bytes stays small.
    tile_r = min(512, _round_up(rows, 8))
    rows_pad = _round_up(rows, tile_r)
    if rows_pad != rows:
        pad = rows_pad - rows
        x1p = jnp.pad(x1p, ((0, pad), (0, 0)))
        x2p = jnp.pad(x2p, ((0, pad), (0, 0)))
        yp = jnp.pad(yp, ((0, pad), (0, 0)))

    num_tiles = rows_pad // tile_r

    kernel = functools.partial(
        _contrastive_loss_kernel,
        margin=float(margin), weight=float(weight), eps=float(eps),
        k=k, d=d, rows_valid=rows, tile_r=tile_r,
    )

    elt_bytes = jnp.dtype(x1.dtype).itemsize
    cost = pl.CostEstimate(
        flops=int(7 * n * d + 10 * n),
        transcendentals=int(n),
        bytes_accessed=int(2 * n * d * elt_bytes + yp.size * 4 + num_tiles * 4),
    )

    partials = pl.pallas_call(
        kernel,
        out_shape=jax.ShapeDtypeStruct((num_tiles, 1), jnp.float32),
        grid=(num_tiles,),
        in_specs=[
            pl.BlockSpec((tile_r, k * d), lambda i: (i, 0)),
            pl.BlockSpec((tile_r, k * d), lambda i: (i, 0)),
            pl.BlockSpec((tile_r, k), lambda i: (i, 0)),
        ],
        out_specs=pl.BlockSpec((1, 1), lambda i: (i, 0),
                               memory_space=pltpu.MemorySpace.SMEM),
        compiler_params=pltpu.CompilerParams(
            dimension_semantics=("parallel",)),
        cost_estimate=cost,
    )(x1p, x2p, yp)

    # Tiny (num_tiles,) reduction + single divide-by-N outside the kernel.
    return jnp.sum(partials) * jnp.float32(1.0 / n)


def _reference(x1, x2, y, *, margin, weight=1.0, eps=1e-6):
    diff = jnp.abs(x1.astype(jnp.float32) - x2.astype(jnp.float32))
    dist_sq = jnp.sum((diff + eps) ** 2, axis=1)
    dist = jnp.sqrt(dist_sq)
    mdist = jnp.clip(margin - dist, 0.0)
    loss = (y * dist_sq + weight * (1.0 - y) * mdist ** 2) * 0.5
    return jnp.mean(loss)


if __name__ == "__main__":
    # Module hyperparameters (deterministic, set in-script).
    margin = 1.0
    weight = 1.0
    eps = 1e-6

    # Small shapes consistent with forward: x1, x2 -> (N, D); y -> (N,)
    N, D = 8, 32
    key = jax.random.PRNGKey(0)
    k1, k2, k3 = jax.random.split(key, 3)
    x1 = jax.random.normal(k1, (N, D), dtype=jnp.float32)
    x2 = jax.random.normal(k2, (N, D), dtype=jnp.float32)
    y = jax.random.bernoulli(k3, 0.5, (N,)).astype(jnp.float32)

    out = contrastive_loss(x1, x2, y, margin=margin, weight=weight, eps=eps)
    out = jax.block_until_ready(out)

    ref = _reference(x1, x2, y, margin=margin, weight=weight, eps=eps)
    assert jnp.allclose(out, ref, rtol=1e-5, atol=1e-6), (out, ref)

    print("KERNEL_OK")
</pallas_src>

<mosaic_0001>
module attributes {stable_mosaic.version = 11 : i64} {
  func.func @_contrastive_loss_kernel(%arg0: i32, %arg1: memref<8x128xf32, #tpu.memory_space<vmem>>, %arg2: memref<8x128xf32, #tpu.memory_space<vmem>>, %arg3: memref<8x4xf32, #tpu.memory_space<vmem>>, %arg4: memref<1x1xf32, #tpu.memory_space<smem>>) attributes {dimension_semantics = [#tpu.dimension_semantics<parallel>], iteration_bounds = array<i64: 1>, scalar_prefetch = 0 : i64, scratch_operands = 0 : i64, tpu.core_type = #tpu.core_type<tc>, window_params = [{transform_indices = @transform_0, window_bounds = array<i64: 8, 128>}, {transform_indices = @transform_1, window_bounds = array<i64: 8, 128>}, {transform_indices = @transform_2, window_bounds = array<i64: 8, 4>}, {transform_indices = @transform_3, window_bounds = array<i64: 1, 1>}]} {
    %c0 = arith.constant 0 : index
    %c0_0 = arith.constant 0 : index
    %0 = vector.load %arg1[%c0, %c0_0] : memref<8x128xf32, #tpu.memory_space<vmem>>, vector<8x128xf32>
    %c0_1 = arith.constant 0 : index
    %c0_2 = arith.constant 0 : index
    %1 = vector.load %arg2[%c0_1, %c0_2] : memref<8x128xf32, #tpu.memory_space<vmem>>, vector<8x128xf32>
    %c0_3 = arith.constant 0 : index
    %c0_4 = arith.constant 0 : index
    %2 = vector.load %arg3[%c0_3, %c0_4] : memref<8x4xf32, #tpu.memory_space<vmem>>, vector<8x4xf32>
    %3 = arith.subf %0, %1 : vector<8x128xf32>
    %4 = math.absf %3 : vector<8x128xf32>
    %cst = arith.constant 9.99999997E-7 : f32
    %5 = vector.broadcast %cst : f32 to vector<8x128xf32>
    %6 = arith.addf %4, %5 : vector<8x128xf32>
    %7 = arith.mulf %6, %6 : vector<8x128xf32>
    %8 = vector.extract_strided_slice %7 {offsets = [0, 0], sizes = [8, 32], strides = [1, 1]} : vector<8x128xf32> to vector<8x32xf32>
    %cst_5 = arith.constant dense<0.000000e+00> : vector<8xf32>
    %9 = vector.multi_reduction <add>, %8, %cst_5 [1] : vector<8x32xf32> to vector<8xf32>
    %10 = vector.shape_cast %9 : vector<8xf32> to vector<8x1xf32>
    %11 = vector.extract_strided_slice %7 {offsets = [0, 32], sizes = [8, 32], strides = [1, 1]} : vector<8x128xf32> to vector<8x32xf32>
    %cst_6 = arith.constant dense<0.000000e+00> : vector<8xf32>
    %12 = vector.multi_reduction <add>, %11, %cst_6 [1] : vector<8x32xf32> to vector<8xf32>
    %13 = vector.shape_cast %12 : vector<8xf32> to vector<8x1xf32>
    %14 = vector.extract_strided_slice %7 {offsets = [0, 64], sizes = [8, 32], strides = [1, 1]} : vector<8x128xf32> to vector<8x32xf32>
    %cst_7 = arith.constant dense<0.000000e+00> : vector<8xf32>
    %15 = vector.multi_reduction <add>, %14, %cst_7 [1] : vector<8x32xf32> to vector<8xf32>
    %16 = vector.shape_cast %15 : vector<8xf32> to vector<8x1xf32>
    %17 = vector.extract_strided_slice %7 {offsets = [0, 96], sizes = [8, 32], strides = [1, 1]} : vector<8x128xf32> to vector<8x32xf32>
    %cst_8 = arith.constant dense<0.000000e+00> : vector<8xf32>
    %18 = vector.multi_reduction <add>, %17, %cst_8 [1] : vector<8x32xf32> to vector<8xf32>
    %19 = vector.shape_cast %18 : vector<8xf32> to vector<8x1xf32>
    %20 = tpu.concatenate %10, %13, %16, %19 in 1 : vector<8x1xf32>, vector<8x1xf32>, vector<8x1xf32>, vector<8x1xf32> -> vector<8x4xf32>
    %21 = math.sqrt %20 : vector<8x4xf32>
    %cst_9 = arith.constant 1.000000e+00 : f32
    %22 = vector.broadcast %cst_9 : f32 to vector<8x4xf32>
    %23 = arith.subf %22, %21 : vector<8x4xf32>
    %cst_10 = arith.constant 0.000000e+00 : f32
    %24 = vector.broadcast %cst_10 : f32 to vector<8x4xf32>
    %25 = arith.maximumf %23, %24 : vector<8x4xf32>
    %26 = arith.mulf %2, %20 : vector<8x4xf32>
    %cst_11 = arith.constant 1.000000e+00 : f32
    %27 = vector.broadcast %cst_11 : f32 to vector<8x4xf32>
    %28 = arith.subf %27, %2 : vector<8x4xf32>
    %cst_12 = arith.constant 1.000000e+00 : f32
    %29 = vector.broadcast %cst_12 : f32 to vector<8x4xf32>
    %30 = arith.mulf %29, %28 : vector<8x4xf32>
    %31 = arith.mulf %25, %25 : vector<8x4xf32>
    %32 = arith.mulf %30, %31 : vector<8x4xf32>
    %33 = arith.addf %26, %32 : vector<8x4xf32>
    %cst_13 = arith.constant 5.000000e-01 : f32
    %34 = vector.broadcast %cst_13 : f32 to vector<8x4xf32>
    %35 = arith.mulf %33, %34 : vector<8x4xf32>
    %c8_i32 = arith.constant 8 : i32
    %36 = arith.muli %arg0, %c8_i32 : i32
    %37 = tpu.iota {dimensions = array<i32: 0>} : vector<8x1xi32>
    %38 = vector.broadcast %36 : i32 to vector<8x1xi32>
    %39 = arith.addi %38, %37 : vector<8x1xi32>
    %c2_i32 = arith.constant 2 : i32
    %40 = vector.broadcast %c2_i32 : i32 to vector<8x1xi32>
    %41 = arith.cmpi slt, %39, %40 : vector<8x1xi32>
    %cst_14 = arith.constant 0.000000e+00 : f32
    %42 = vector.shape_cast %41 : vector<8x1xi1> to vector<8x1xi1>
    %43 = vector.broadcast %42 : vector<8x1xi1> to vector<8x4xi1>
    %44 = vector.broadcast %cst_14 : f32 to vector<8x4xf32>
    %45 = arith.select %43, %35, %44 : vector<8x4xi1>, vector<8x4xf32>
    %46 = vector.shape_cast %45 : vector<8x4xf32> to vector<1x8x4xf32>
    %cst_15 = arith.constant dense<0.000000e+00> : vector<1xf32>
    %47 = vector.multi_reduction <add>, %46, %cst_15 [1, 2] : vector<1x8x4xf32> to vector<1xf32>
    %48 = vector.shape_cast %47 : vector<1xf32> to vector<1x1x1xf32>
    %49 = vector.extract %48[0, 0, 0] : f32 from vector<1x1x1xf32>
    %c0_16 = arith.constant 0 : index
    %c0_17 = arith.constant 0 : index
    %50 = memref.load %arg4[%c0_16, %c0_17] : memref<1x1xf32, #tpu.memory_space<smem>>
    memref.store %49, %arg4[%c0_16, %c0_17] : memref<1x1xf32, #tpu.memory_space<smem>>
    return
  }
  func.func @transform_0(%arg0: i32) -> (i32, i32) {
    %c0_i32 = arith.constant 0 : i32
    %c0_i32_0 = arith.constant 0 : i32
    return %arg0, %c0_i32 : i32, i32
  }
  func.func @transform_1(%arg0: i32) -> (i32, i32) {
    %c0_i32 = arith.constant 0 : i32
    %c0_i32_0 = arith.constant 0 : i32
    return %arg0, %c0_i32 : i32, i32
  }
  func.func @transform_2(%arg0: i32) -> (i32, i32) {
    %c0_i32 = arith.constant 0 : i32
    %c0_i32_0 = arith.constant 0 : i32
    return %arg0, %c0_i32 : i32, i32
  }
  func.func @transform_3(%arg0: i32) -> (i32, i32) {
    %c0_i32 = arith.constant 0 : i32
    %c0_i32_0 = arith.constant 0 : i32
    return %arg0, %c0_i32 : i32, i32
  }
}

</mosaic_0001>

<bundles_post_ra>
// kernel: tpu_custom_call.1
= control target key start
LH: loop header
LB: loop body
LE: loop exit
PB: predicated region body
PF: predicated region fallthrough
CT: control target
= control target key end

     0   :  { %8 = vsyncpa [#allocation3], 0  ;;  %s214_s0 = inlined_call_operand.vmem [shape: f32[8,128], index: 0, kind: input, shape index: {}]   ;;  %s215_s1 = inlined_call_operand.hbm [shape: f32[8,128], index: 1, kind: input, shape index: {}]   ;;  %s216_s2 = inlined_call_operand.vmem [shape: f32[8,4], index: 2, kind: input, shape index: {}]   ;;  %s217_s3 = inlined_call_operand.hbm [shape: f32[1,1], index: 3, kind: output, shape index: {}]  }
   0x1   :  { %9 = vsyncpa [#allocation4], 0  ;;  %s159_s12 = smov [#allocation2]   ;;  %s123_s16 = scalar_lea.hbm %s215_s1, 128 }
   0x2   :  { %s18_s13 = sshll.u32 %s159_s12, 4  ;;  %p124_p0 = scmp.ne.s32.totalorder %s215_s1, %s123_s16  ;;  %s19_s13 = int_to_ptr.vmem [resolvable:$true] %s18_s13 }
   0x3   :  { %p127_p1 = scmp.lt.u32.totalorder %s123_s16, %s215_s1 }
   0x5   :  { %p129_p2 = pnand %p127_p1, %p124_p0 }
   0x7   :  { %132 = shalt.err (!%p129_p2)
}
   0x8   :  { %s133_s21 = scalar_lea.vmem %s19_s13, 128  ;;  %p138_p4 = scmp.lt.s32.totalorder %s19_s13, %s19_s13 }
   0x9   :  { %p134_p3 = scmp.ne.s32.totalorder %s19_s13, %s133_s21  ;;  %p139_p5 = scmp.lt.s32.totalorder %s133_s21, %s133_s21 }
   0xb   :  { %p140_p6 = por %p139_p5, %p138_p4 }
   0xd   :  { %p141_p7 = pnand %p140_p6, %p134_p3 }
   0xf   :  { %144 = shalt.err (!%p141_p7)
}
  0x10   :  { %21 = dma.hbm_to_vmem [thread:$0]  %s215_s1, 128, %s19_s13, [#allocation3]  }
  0x11   :  { %155 = dma.done.wait [#allocation3], 128  }
  0x12   :  { %156 = vsyncadd [#allocation3], 4294967168  ;;  %v27_v0 = vld [vmem:[%s214_s0] sm:$0xff]  ;;  %s160_s26 = smov 96   ;;  %s161_s27 = smov 32   ;;  %vm34_vm0 = vcmask 261120   ;;  %v79_v27 = vlaneseq }
  0x13   :  { %v28_v1 = vld [vmem:[#allocation2] sm:$0xff]  ;;  %s162_s28 = smov 64   ;;  %vm57_vm1 = vcmask 7168   ;;  %vm59_vm2 = vcmask 15360   ;;  %vm61_vm3 = vcmask 23552   ;;  %vm87_vm7 = vcmask 31744  }
  0x14   :  { %v30_v2 = vsub.f32 %v27_v0, %v28_v1  ;;  %v29_v26 = vld [vmem:[%s216_s2] sm:$0xff]  ;;  %v80_v31 = vshrl.u32 %v79_v27, 7  ;;  %s145_s4 = scalar_lea.hbm %s217_s3, 16 }
  0x15   :  { %v73_v29 = vsub.f32 1.0, %v29_v26  ;;  %p146_p8 = scmp.ne.s32.totalorder %s217_s3, %s145_s4  ;;  %p149_p9 = scmp.lt.u32.totalorder %s145_s4, %s217_s3 }
  0x16   :  { %v31_v3 = vand.u32 2147483647, %v30_v2  ;;  %vm83_vm6 = vcmp.lt.s32.totalorder %v80_v31, 2 }
  0x17   :  { %p151_p10 = pnand %p149_p9, %p146_p8 }
  0x18   :  { %v32_v4 = vadd.f32 1e-06, %v31_v3 }
  0x1a   :  { %v33_v5 = vmul.f32 %v32_v4, %v32_v4 }
  0x1c   :  { %39 = vrot.lane.b32.xlu0 %v33_v5, %s160_s26  ;;  %51 = vrot.lane.b32.xlu1 %v33_v5, %s161_s27  ;;  %v35_v6 = vsel %vm34_vm0, %v33_v5, 0.0 }
  0x20   :  { %45 = vrot.lane.b32.xlu0 %v33_v5, %s162_s28 }
  0x40   :  { %36 = vadd.xlane.f32.xlu1 %v35_v6 }
  0x8e   :  { %v40_v7 = vpop.permute.xlu0 %39  ;;  %v52_v8 = vpop.permute.xlu1 %51 }
  0x8f   :  { %v42_v9 = vsel %vm34_vm0, %v40_v7, 0.0  ;;  %v54_v10 = vsel %vm34_vm0, %v52_v8, 0.0 }
  0x90   :  { %43 = vadd.xlane.f32.xlu0 %v42_v9  ;;  %55 = vadd.xlane.f32.xlu1 %v54_v10 }
  0x92   :  { %v46_v11 = vpop.permute.xlu0 %45 }
  0x93   :  { %v48_v12 = vsel %vm34_vm0, %v46_v11, 0.0 }
  0x94   :  { %49 = vadd.xlane.f32.xlu0 %v48_v12 }
  0xcd   :  { %v37_v13 = vpop.xlane.xlu1 %36 }
 0x11d   :  { %v44_v14 = vpop.xlane.xlu0 %43  ;;  %v56_v15 = vpop.xlane.xlu1 %55 }
 0x11e   :  { %v58_v16 = vsel %vm57_vm1, %v37_v13, %v44_v14 }
 0x121   :  { %v50_v17 = vpop.xlane.xlu0 %49 }
 0x122   :  { %v60_v18 = vsel %vm59_vm2, %v58_v16, %v50_v17 }
 0x123   :  { %v62_v19 = vsel %vm61_vm3, %v60_v18, %v56_v15 }
 0x124   :  { %121 = vrsqrt.f32 %v62_v19  ;;  %vm65_vm4 = vcmp.eq.f32.partialorder %v62_v19, inf  ;;  %v68_v22 = vand.u32 2147483648, %v62_v19  ;;  %vm67_vm5 = vcmp.eq.f32.partialorder %v62_v19, 0.0 }
 0x125   :  { %v72_v32 = vmul.f32 %v62_v19, %v29_v26 }
 0x12e   :  { %v122_v20 = vpop.eup %121 }
 0x12f   :  { %v64_v21 = vmul.f32 %v122_v20, %v62_v19 }
 0x131   :  { %v66_v23 = vsel %vm65_vm4, %v62_v19, %v64_v21 }
 0x132   :  { %v69_v24 = vsel %vm67_vm5, %v68_v22, %v66_v23 }
 0x133   :  { %v70_v25 = vsub.f32 1.0, %v69_v24 }
 0x135   :  { %v71_v28 = vmax.f32 %v70_v25, 0.0 }
 0x137   :  { %v74_v30 = vmul.f32 %v71_v28, %v71_v28 }
 0x139   :  { %v75_v33 = vmul.f32 %v74_v30, %v73_v29 }
 0x13b   :  { %v76_v34 = vadd.f32 %v75_v33, %v72_v32 }
 0x13d   :  { %v77_v35 = vmul.f32 0.5, %v76_v34 }
 0x13f   :  { %v86_v36 = vsel %vm83_vm6, %v77_v35, 0.0 }
 0x140   :  { %v88_v37 = vsel %vm87_vm7, %v86_v36, 0.0 }
 0x141   :  { %89 = vadd.xlane.f32.xlu0 %v88_v37 }
 0x1ce   :  { %v90_v38 = vpop.xlane.xlu0 %89 }
 0x1cf   :  { %v91_v39 = vrot.slane %v90_v38, 4 }
 0x1d1   :  { %v92_v40 = vadd.f32 %v91_v39, %v90_v38 }
 0x1d3   :  { %v93_v41 = vrot.slane %v92_v40, 2 }
 0x1d5   :  { %v94_v42 = vadd.f32 %v93_v41, %v92_v40 }
 0x1d7   :  { %v95_v43 = vrot.slane %v94_v42, 1 }
 0x1d9   :  { %v96_v44 = vadd.f32 %v95_v43, %v94_v42 }
 0x1db   :  { %114 = vpush %v96_v44 }
 0x20c   :  { %s115_s2 = spop %114 }
 0x20d   :  { %99 = sst [smem:[#allocation5]] %s115_s2 }
 0x20e   :  { %154 = shalt.err (!%p151_p10)
}
 0x20f   :  { %s163_s9 = smov [#allocation5]  }
 0x210   :  { %107 = dma.smem_to_hbm %s163_s9, 16, %s217_s3, [#allocation4]  }
 0x211   :  { %157 = dma.done.wait [#allocation4], 16  }
 0x212   :  { %158 = vsyncadd [#allocation4], 4294967280 }
 0x213   :  { %111 = sfence }
 0x214   :  { %112 = vsyncpa [#allocation3], 1 }
 0x215   :  { %113 = vsyncpa [#allocation4], 1 }

</bundles_post_ra>
